<compile_context>
chip_gen: v7x
topology: tpu7x:2x2x1
jax: 0.10.0
libtpu: 0.0.40
codegen_flags: <defaults>
</compile_context>

<pallas_src>
import functools

import jax
import jax.numpy as jnp
from jax.experimental import pallas as pl
from jax.experimental.pallas import tpu as pltpu

_LOG_2PI = float(jnp.log(2.0 * jnp.pi))


def _round_up(x, m):
    return ((x + m - 1) // m) * m


def _actor_critic_kernel(x_ref, eps_ref, w_ref, aux_ref, out_ref,
                         *, n_in, hidden, n_out):
    # --- unpack resident parameter slabs (static slices, zero runtime cost) ---
    w1 = w_ref[0:n_in, 0:hidden]                                # (n_in, H)
    w2 = w_ref[n_in:n_in + hidden, 0:hidden]                    # (H, H)
    wh = w_ref[n_in + hidden:n_in + 2 * hidden, 0:n_out + 1]    # (H, n_out+1) fused policy|value

    b1 = aux_ref[0:1, 0:hidden]
    b2 = aux_ref[1:2, 0:hidden]
    bh = aux_ref[2:3, 0:n_out + 1]
    logstd = aux_ref[3:4, 0:n_out]
    std = aux_ref[4:5, 0:n_out]          # exp(logstd) precomputed on host

    x = x_ref[...]

    # core = relu(fc2(relu(fc1(x))))
    h1 = jnp.maximum(jnp.dot(x, w1, preferred_element_type=jnp.float32) + b1, 0.0)
    core = jnp.maximum(jnp.dot(h1, w2, preferred_element_type=jnp.float32) + b2, 0.0)

    # fused policy / value head: single MXU pass, split columns afterwards
    head = jnp.dot(core, wh, preferred_element_type=jnp.float32) + bh   # (TB, n_out+1)
    policy = head[:, 0:n_out]
    value = head[:, n_out:n_out + 1]

    # Normal(policy, std).sample() == policy + std * eps
    action = policy + std * eps_ref[...]

    # Normal.log_prob(action), summed per row (lane reduce on the XLU);
    # full-batch scalar sum is finished in the wrapper over valid rows only.
    diff = action - policy
    lp = -(diff * diff) / (2.0 * std * std) - logstd - 0.5 * _LOG_2PI
    lp_row = jnp.sum(lp, axis=-1, keepdims=True)                 # (TB, 1)

    # single output slab: [action | value | row_logprob]
    out_ref[:, 0:n_out] = action
    out_ref[:, n_out:n_out + 1] = value
    out_ref[:, n_out + 1:n_out + 2] = lp_row


def pack_params(params):
    """Pack the nn.Linear-style params into 2 kernel slabs (call once)."""
    w1, b1 = params["w1"], params["b1"]
    w2, b2 = params["w2"], params["b2"]
    wp, bp = params["wp"], params["bp"]
    wv, bv = params["wv"], params["bv"]
    logstd = params["logstd"]

    n_in, hidden = w1.shape
    n_out = wp.shape[1]
    width = max(hidden, n_out + 1)

    # fused policy|value head
    wh = jnp.concatenate([wp, wv], axis=1)          # (H, n_out+1)
    bh = jnp.concatenate([bp, bv], axis=1)          # (1, n_out+1)

    def pad_cols(a):
        return jnp.pad(a, ((0, 0), (0, width - a.shape[1])))

    # one weight slab: rows [0,n_in)=w1, [n_in,n_in+H)=w2, [n_in+H,n_in+2H)=wh
    w_slab = jnp.concatenate([pad_cols(w1), pad_cols(w2), pad_cols(wh)], axis=0)

    # one aux slab: b1 / b2 / bh / logstd / std rows
    aux = jnp.zeros((8, width), jnp.float32)
    aux = aux.at[0, :hidden].set(b1[0])
    aux = aux.at[1, :hidden].set(b2[0])
    aux = aux.at[2, :n_out + 1].set(bh[0])
    aux = aux.at[3, :n_out].set(logstd[0])
    aux = aux.at[4, :n_out].set(jnp.exp(logstd[0]))

    return dict(w_slab=w_slab, aux=aux, logstd=logstd,
                dims=(n_in, hidden, n_out))


def actor_critic_forward(x, packed, eps, *, tile_b=256):
    """Returns (action, log_prob_sum, entropy, value) matching the torch module."""
    B = x.shape[0]
    n_in, hidden, n_out = packed["dims"]
    w_slab, aux, logstd = packed["w_slab"], packed["aux"], packed["logstd"]

    # batch tiling: sublane-aligned tile, pad B up so tiles are full
    tb = _round_up(max(8, min(tile_b, _round_up(B, 8))), 8)
    Bp = _round_up(B, tb)
    if Bp != B:
        x = jnp.pad(x, ((0, Bp - B), (0, 0)))
        eps = jnp.pad(eps, ((0, Bp - B), (0, 0)))
    num_tiles = Bp // tb

    kernel = functools.partial(_actor_critic_kernel,
                               n_in=n_in, hidden=hidden, n_out=n_out)

    out = pl.pallas_call(
        kernel,
        out_shape=jax.ShapeDtypeStruct((Bp, n_out + 2), jnp.float32),
        grid=(num_tiles,),
        in_specs=[
            pl.BlockSpec((tb, n_in), lambda i: (i, 0)),        # x: streamed per tile
            pl.BlockSpec((tb, n_out), lambda i: (i, 0)),       # eps: streamed per tile
            pl.BlockSpec(w_slab.shape, lambda i: (0, 0)),      # weights: VMEM-resident
            pl.BlockSpec(aux.shape, lambda i: (0, 0)),         # biases/logstd/std: resident
        ],
        out_specs=pl.BlockSpec((tb, n_out + 2), lambda i: (i, 0)),
        compiler_params=pltpu.CompilerParams(
            dimension_semantics=("parallel",)),                # v7x: 2 TCs split batch
    )(x, eps, w_slab, aux)

    action = out[:B, 0:n_out]
    value = out[:B, n_out:n_out + 1]
    lp_sum = jnp.sum(out[:B, n_out + 1])                       # reduce per-row partials

    # entropy depends only on logstd -> computed outside the kernel
    entropy = jnp.broadcast_to(0.5 + 0.5 * _LOG_2PI + logstd, (B, n_out))
    return action, lp_sum, entropy, value


def init_params(key, n_inputs, n_outputs, hidden_size):
    """Deterministic synthetic init (shapes match nn.Linear of the torch module)."""
    ks = jax.random.split(key, 8)

    def linear(kw, kb, fan_in, fan_out):
        bound = 1.0 / jnp.sqrt(fan_in)
        w = jax.random.uniform(kw, (fan_in, fan_out), jnp.float32, -bound, bound)
        b = jax.random.uniform(kb, (1, fan_out), jnp.float32, -bound, bound)
        return w, b

    w1, b1 = linear(ks[0], ks[1], n_inputs, hidden_size)
    w2, b2 = linear(ks[2], ks[3], hidden_size, hidden_size)
    wp, bp = linear(ks[4], ks[5], hidden_size, n_outputs)
    wv, bv = linear(ks[6], ks[7], hidden_size, 1)
    logstd = jnp.zeros((1, n_outputs), jnp.float32)
    return dict(w1=w1, b1=b1, w2=w2, b2=b2, wp=wp, bp=bp, wv=wv, bv=bv, logstd=logstd)


def _reference_forward(x, params, eps):
    """Pure-JAX reference of the torch forward (for a loose correctness check)."""
    h1 = jnp.maximum(x @ params["w1"] + params["b1"], 0.0)
    core = jnp.maximum(h1 @ params["w2"] + params["b2"], 0.0)
    policy = core @ params["wp"] + params["bp"]
    value = core @ params["wv"] + params["bv"]
    std = jnp.exp(params["logstd"])
    action = policy + std * eps
    lp = -((action - policy) ** 2) / (2.0 * std * std) - params["logstd"] - 0.5 * _LOG_2PI
    ent = jnp.broadcast_to(0.5 + 0.5 * _LOG_2PI + params["logstd"], policy.shape)
    return action, jnp.sum(lp), ent, value


if __name__ == "__main__":
    B, N_IN, N_OUT, HIDDEN = 2, 16, 8, 32

    key = jax.random.PRNGKey(0)
    k_params, k_x, k_eps = jax.random.split(key, 3)

    params = init_params(k_params, N_IN, N_OUT, HIDDEN)
    packed = pack_params(params)
    x = jax.random.normal(k_x, (B, N_IN), jnp.float32)
    eps = jax.random.normal(k_eps, (B, N_OUT), jnp.float32)   # sampling noise

    action, lp_sum, entropy, value = actor_critic_forward(x, packed, eps)
    jax.block_until_ready((action, lp_sum, entropy, value))

    # shapes must match the torch module's outputs
    assert action.shape == (B, N_OUT)
    assert lp_sum.shape == ()
    assert entropy.shape == (B, N_OUT)
    assert value.shape == (B, 1)

    # loose numerical check against a pure-JAX reference (fp32 / MXU precision)
    ra, rl, re, rv = _reference_forward(x, params, eps)
    assert jnp.allclose(action, ra, atol=1e-2, rtol=1e-2)
    assert jnp.allclose(lp_sum, rl, atol=1e-2, rtol=1e-2)
    assert jnp.allclose(entropy, re, atol=1e-2, rtol=1e-2)
    assert jnp.allclose(value, rv, atol=1e-2, rtol=1e-2)

    print("KERNEL_OK")
</pallas_src>

<mosaic_0001>
module attributes {stable_mosaic.version = 11 : i64} {
  func.func @_actor_critic_kernel(%arg0: i32, %arg1: memref<8x16xf32, #tpu.memory_space<vmem>>, %arg2: memref<8x8xf32, #tpu.memory_space<vmem>>, %arg3: memref<80x32xf32, #tpu.memory_space<vmem>>, %arg4: memref<8x32xf32, #tpu.memory_space<vmem>>, %arg5: memref<8x10xf32, #tpu.memory_space<vmem>>) attributes {dimension_semantics = [#tpu.dimension_semantics<parallel>], iteration_bounds = array<i64: 1>, scalar_prefetch = 0 : i64, scratch_operands = 0 : i64, tpu.core_type = #tpu.core_type<tc>, window_params = [{transform_indices = @transform_0, window_bounds = array<i64: 8, 16>}, {transform_indices = @transform_1, window_bounds = array<i64: 8, 8>}, {pipeline_mode = #tpu.pipeline_mode<synchronous>, transform_indices = @transform_2, window_bounds = array<i64: 80, 32>}, {pipeline_mode = #tpu.pipeline_mode<synchronous>, transform_indices = @transform_3, window_bounds = array<i64: 8, 32>}, {transform_indices = @transform_4, window_bounds = array<i64: 8, 10>}]} {
    %c0 = arith.constant 0 : index
    %c0_0 = arith.constant 0 : index
    %0 = vector.load %arg3[%c0, %c0_0] : memref<80x32xf32, #tpu.memory_space<vmem>>, vector<16x32xf32>
    %c16 = arith.constant 16 : index
    %c0_1 = arith.constant 0 : index
    %1 = vector.load %arg3[%c16, %c0_1] : memref<80x32xf32, #tpu.memory_space<vmem>>, vector<32x32xf32>
    %c48 = arith.constant 48 : index
    %c0_2 = arith.constant 0 : index
    %2 = vector.load %arg3[%c48, %c0_2] : memref<80x32xf32, #tpu.memory_space<vmem>>, vector<32x9xf32>
    %c0_3 = arith.constant 0 : index
    %c0_4 = arith.constant 0 : index
    %3 = vector.load %arg4[%c0_3, %c0_4] : memref<8x32xf32, #tpu.memory_space<vmem>>, vector<1x32xf32>
    %c1 = arith.constant 1 : index
    %c0_5 = arith.constant 0 : index
    %4 = vector.load %arg4[%c1, %c0_5] : memref<8x32xf32, #tpu.memory_space<vmem>>, vector<1x32xf32>
    %c2 = arith.constant 2 : index
    %c0_6 = arith.constant 0 : index
    %5 = vector.load %arg4[%c2, %c0_6] : memref<8x32xf32, #tpu.memory_space<vmem>>, vector<1x9xf32>
    %c3 = arith.constant 3 : index
    %c0_7 = arith.constant 0 : index
    %6 = vector.load %arg4[%c3, %c0_7] : memref<8x32xf32, #tpu.memory_space<vmem>>, vector<1x8xf32>
    %c4 = arith.constant 4 : index
    %c0_8 = arith.constant 0 : index
    %7 = vector.load %arg4[%c4, %c0_8] : memref<8x32xf32, #tpu.memory_space<vmem>>, vector<1x8xf32>
    %c0_9 = arith.constant 0 : index
    %c0_10 = arith.constant 0 : index
    %8 = vector.load %arg1[%c0_9, %c0_10] : memref<8x16xf32, #tpu.memory_space<vmem>>, vector<8x16xf32>
    %cst = arith.constant dense<0.000000e+00> : vector<8x32xf32>
    %9 = tpu.matmul %8, %0, %cst {dimension_numbers = #tpu.dot_dimension_numbers<[1], [0], [0], [1], [0, 0, 1, 1], [], []>} : vector<8x16xf32>, vector<16x32xf32>, vector<8x32xf32> -> vector<8x32xf32>
    %10 = vector.broadcast %3 : vector<1x32xf32> to vector<8x32xf32>
    %11 = arith.addf %9, %10 : vector<8x32xf32>
    %cst_11 = arith.constant 0.000000e+00 : f32
    %12 = vector.broadcast %cst_11 : f32 to vector<8x32xf32>
    %13 = arith.maximumf %11, %12 : vector<8x32xf32>
    %cst_12 = arith.constant dense<0.000000e+00> : vector<8x32xf32>
    %14 = tpu.matmul %13, %1, %cst_12 {dimension_numbers = #tpu.dot_dimension_numbers<[1], [0], [0], [1], [0, 0, 1, 1], [], []>} : vector<8x32xf32>, vector<32x32xf32>, vector<8x32xf32> -> vector<8x32xf32>
    %15 = vector.broadcast %4 : vector<1x32xf32> to vector<8x32xf32>
    %16 = arith.addf %14, %15 : vector<8x32xf32>
    %cst_13 = arith.constant 0.000000e+00 : f32
    %17 = vector.broadcast %cst_13 : f32 to vector<8x32xf32>
    %18 = arith.maximumf %16, %17 : vector<8x32xf32>
    %cst_14 = arith.constant dense<0.000000e+00> : vector<8x9xf32>
    %19 = tpu.matmul %18, %2, %cst_14 {dimension_numbers = #tpu.dot_dimension_numbers<[1], [0], [0], [1], [0, 0, 1, 1], [], []>} : vector<8x32xf32>, vector<32x9xf32>, vector<8x9xf32> -> vector<8x9xf32>
    %20 = vector.broadcast %5 : vector<1x9xf32> to vector<8x9xf32>
    %21 = arith.addf %19, %20 : vector<8x9xf32>
    %22 = vector.extract_strided_slice %21 {offsets = [0, 0], sizes = [8, 8], strides = [1, 1]} : vector<8x9xf32> to vector<8x8xf32>
    %23 = vector.extract_strided_slice %21 {offsets = [0, 8], sizes = [8, 1], strides = [1, 1]} : vector<8x9xf32> to vector<8x1xf32>
    %c0_15 = arith.constant 0 : index
    %c0_16 = arith.constant 0 : index
    %24 = vector.load %arg2[%c0_15, %c0_16] : memref<8x8xf32, #tpu.memory_space<vmem>>, vector<8x8xf32>
    %25 = vector.broadcast %7 : vector<1x8xf32> to vector<8x8xf32>
    %26 = arith.mulf %25, %24 : vector<8x8xf32>
    %27 = arith.addf %22, %26 : vector<8x8xf32>
    %28 = arith.subf %27, %22 : vector<8x8xf32>
    %29 = arith.mulf %28, %28 : vector<8x8xf32>
    %cst_17 = arith.constant 0.000000e+00 : f32
    %30 = vector.broadcast %cst_17 : f32 to vector<8x8xf32>
    %31 = arith.subf %30, %29 : vector<8x8xf32>
    %cst_18 = arith.constant 2.000000e+00 : f32
    %32 = vector.broadcast %cst_18 : f32 to vector<1x8xf32>
    %33 = arith.mulf %32, %7 : vector<1x8xf32>
    %34 = arith.mulf %33, %7 : vector<1x8xf32>
    %35 = vector.broadcast %34 : vector<1x8xf32> to vector<8x8xf32>
    %36 = arith.divf %31, %35 : vector<8x8xf32>
    %37 = vector.broadcast %6 : vector<1x8xf32> to vector<8x8xf32>
    %38 = arith.subf %36, %37 : vector<8x8xf32>
    %cst_19 = arith.constant 0.918938517 : f32
    %39 = vector.broadcast %cst_19 : f32 to vector<8x8xf32>
    %40 = arith.subf %38, %39 : vector<8x8xf32>
    %cst_20 = arith.constant dense<0.000000e+00> : vector<8xf32>
    %41 = vector.multi_reduction <add>, %40, %cst_20 [1] : vector<8x8xf32> to vector<8xf32>
    %42 = vector.shape_cast %41 : vector<8xf32> to vector<8x1xf32>
    %c0_21 = arith.constant 0 : index
    %c0_22 = arith.constant 0 : index
    %43 = vector.load %arg5[%c0_21, %c0_22] : memref<8x10xf32, #tpu.memory_space<vmem>>, vector<8x8xf32>
    tpu.vector_store %arg5[%c0_21, %c0_22], %27 {strides = array<i32>} : memref<8x10xf32, #tpu.memory_space<vmem>>, vector<8x8xf32>,
    %c0_23 = arith.constant 0 : index
    %c8 = arith.constant 8 : index
    %44 = vector.load %arg5[%c0_23, %c8] : memref<8x10xf32, #tpu.memory_space<vmem>>, vector<8x1xf32>
    tpu.vector_store %arg5[%c0_23, %c8], %23 {strides = array<i32>} : memref<8x10xf32, #tpu.memory_space<vmem>>, vector<8x1xf32>,
    %c0_24 = arith.constant 0 : index
    %c9 = arith.constant 9 : index
    %45 = vector.load %arg5[%c0_24, %c9] : memref<8x10xf32, #tpu.memory_space<vmem>>, vector<8x1xf32>
    tpu.vector_store %arg5[%c0_24, %c9], %42 {strides = array<i32>} : memref<8x10xf32, #tpu.memory_space<vmem>>, vector<8x1xf32>,
    return
  }
  func.func @transform_0(%arg0: i32) -> (i32, i32) {
    %c0_i32 = arith.constant 0 : i32
    %c0_i32_0 = arith.constant 0 : i32
    return %arg0, %c0_i32 : i32, i32
  }
  func.func @transform_1(%arg0: i32) -> (i32, i32) {
    %c0_i32 = arith.constant 0 : i32
    %c0_i32_0 = arith.constant 0 : i32
    return %arg0, %c0_i32 : i32, i32
  }
  func.func @transform_2(%arg0: i32) -> (i32, i32) {
    %c0_i32 = arith.constant 0 : i32
    %c0_i32_0 = arith.constant 0 : i32
    %c0_i32_1 = arith.constant 0 : i32
    return %c0_i32, %c0_i32_0 : i32, i32
  }
  func.func @transform_3(%arg0: i32) -> (i32, i32) {
    %c0_i32 = arith.constant 0 : i32
    %c0_i32_0 = arith.constant 0 : i32
    %c0_i32_1 = arith.constant 0 : i32
    return %c0_i32, %c0_i32_0 : i32, i32
  }
  func.func @transform_4(%arg0: i32) -> (i32, i32) {
    %c0_i32 = arith.constant 0 : i32
    %c0_i32_0 = arith.constant 0 : i32
    return %arg0, %c0_i32 : i32, i32
  }
}

</mosaic_0001>

<bundles_post_ra>
// kernel: tpu_custom_call.1
= control target key start
LH: loop header
LB: loop body
LE: loop exit
PB: predicated region body
PF: predicated region fallthrough
CT: control target
= control target key end

     0   :  { %v411_v2 = vmov 0.0|0.0   ;;  %vm412_vm0 = vmmov 0   ;;  %v413_v4 = vmov 0.0   ;;  %s506_s0 = inlined_call_operand.vmem [shape: f32[8,16], index: 0, kind: input, shape index: {}]   ;;  %s507_s1 = inlined_call_operand.vmem [shape: f32[8,8], index: 1, kind: input, shape index: {}]   ;;  %s508_s2 = inlined_call_operand.vmem [shape: f32[80,32], index: 2, kind: input, shape index: {}]   ;;  %s509_s3 = inlined_call_operand.vmem [shape: f32[8,32], index: 3, kind: input, shape index: {}]   ;;  %s510_s4 = inlined_call_operand.hbm [shape: f32[8,10], index: 4, kind: output, shape index: {}]  }
   0x1   :  { %v18_v0 = vld [vmem:[%s508_s2] sm:$0xff]  ;;  %v19_v1 = vld [vmem:[%s508_s2 + $0x8] sm:$0xff]  ;;  %366 = vmatprep.subr.bf16.mxu0 %v411_v2  ;;  %341 = vmatprep.mubr.msk.f32.mxu0 %vm412_vm0, %v413_v4  ;;  %v20_v5 = vld [vmem:[%s508_s2 + $0x10] sm:$0xff] }
   0x2   :  { %v367_v3 = vpack.c.bf16 %v19_v1, %v18_v0  ;;  %v21_v6 = vld [vmem:[%s508_s2 + $0x18] sm:$0xff]  ;;  %369 = vmatprep.subr.bf16.mxu1 %v411_v2  ;;  %352 = vmatprep.mubr.msk.f32.mxu1 %vm412_vm0, %v413_v4 }
   0x3   :  { %v370_v7 = vpack.c.bf16 %v21_v6, %v20_v5 }
   0x4   :  { %9 = vsyncpa [#allocation3], 0  ;;  %368 = vmatpush3.bf16.msra.mxu0 %v367_v3  ;;  %v33_v8 = vld [vmem:[%s506_s0] sm:$0xff]  ;;  %vm38_vm1 = vcmask 130048   ;;  %v23_v10 = vld [vmem:[%s508_s2 + $0x28] sm:$0xff]  ;;  %vm117_vm2 = vcmask 261120   ;;  %v270_v28 = vlaneseq }
   0x5   :  { %371 = vmatpush3.bf16.msra.mxu1 %v370_v7  ;;  %375 = vmatprep.subr.bf16.mxu0 %v411_v2  ;;  %v22_v9 = vld [vmem:[%s508_s2 + $0x20] sm:$0xff]  ;;  %v24_v12 = vld [vmem:[%s508_s2 + $0x30] sm:$0xff]  ;;  %v25_v13 = vld [vmem:[%s508_s2 + $0x38] sm:$0xff]  ;;  %vm293_vm3 = vcmask 64512   ;;  %vm298_vm4 = vcmask 72768   ;;  %s414_s20 = smov [#allocation2]  }
   0x6   :  { %372 = vmatprep.subr.bf16.mxu1 %v411_v2  ;;  %v373_v11 = vpack.c.bf16 %v23_v10, %v22_v9  ;;  %v376_v14 = vpack.c.bf16 %v25_v13, %v24_v12  ;;  %v316_v15 = vld [vmem:[%s509_s3] ss:$0 sm:$0xff]  ;;  %v27_v21 = vld [vmem:[%s508_s2 + $0x48] sm:$0xff]  ;;  %v318_v23 = vld [vmem:[%s509_s3 + $0x1] ss:$0 sm:$0xff]  ;;  %v271_v30 = vshrl.u32 %v270_v28, 7 }
   0x7   :  { %342 = vmatmul.mubr.msk.f32.vlgmr.msra.gmra.mrb[0].mxu0 %vm38_vm1, %v33_v8  ;;  %v26_v20 = vld [vmem:[%s508_s2 + $0x40] sm:$0xff]  ;;  %s308_s21 = sshll.u32 %s414_s20, 4  ;;  %vm300_vm5 = vcmask 80968   ;;  %s309_s21 = int_to_ptr.vmem [resolvable:$true] %s308_s21 }
   0x8   :  { %363 = vmatprep.mubr.msk.f32.mxu0 %vm412_vm0, %v413_v4  ;;  %377 = vmatpush3.bf16.msra.mxu0 %v376_v14  ;;  %v379_v22 = vpack.c.bf16 %v27_v21, %v26_v20  ;;  %v32_v29 = vld [vmem:[%s509_s3 + $0x4] sm:$0x1]  ;;  %v272_v32 = vsub.s32 0, %v271_v30  ;;  %v320_v37 = vld [vmem:[%s509_s3 + $0x2] ss:$0 sm:$0xff]  ;;  %s387_s22 = scalar_lea.vmem %s309_s21, 128  ;;  %p392_p1 = scmp.lt.s32.totalorder %s309_s21, %s309_s21 }
   0x9   :  { %374 = vmatpush3.bf16.msra.mxu1 %v373_v11  ;;  %378 = vmatprep.subr.bf16.mxu0 %v411_v2  ;;  %v279_v31 = vmul.f32 2.0, %v32_v29  ;;  %v269_v36 = vld [vmem:[%s507_s1] sm:$0xff]  ;;  %p388_p0 = scmp.ne.s32.totalorder %s309_s21, %s387_s22  ;;  %p393_p2 = scmp.lt.s32.totalorder %s387_s22, %s387_s22 }
   0xa   :  { %v273_v35 = vrot.slane %v32_v29, %v272_v32  ;;  %v322_v47 = vld [vmem:[%s509_s3 + $0x3] ss:$0 sm:$0xff] }
   0xb   :  { %v280_v33 = vmul.f32 %v279_v31, %v32_v29  ;;  %p394_p3 = por %p393_p2, %p392_p1 }
   0xc   :  { %380 = vmatpush3.bf16.msra.mxu0 %v379_v22  ;;  %v274_v38 = vmul.f32 %v273_v35, %v269_v36 }
   0xd   :  { %v284_v34 = vrot.slane %v280_v33, %v272_v32  ;;  %p395_p4 = pnand %p394_p3, %p388_p0 }
   0xf   :  { %385 = vrcp.f32 %v284_v34 }
  0x19   :  { %v386_v45 = vpop.eup %385 }
  0xda   :  { %v108_v16 = vpop.f32.mrb[0].mxu0 }
  0xdb   :  { %v109_v17 = vadd.f32 %v316_v15, %v108_v16  ;;  %v343_v18 = vpop.f32.mrb[1].mxu0 }
  0xdd   :  { %v112_v19 = vmax.f32 %v109_v17, 0.0 }
  0xdf   :  { %353 = vmatmul.mubr.msk.f32.vlgmr.msra.gmra.mrb[0].mxu1 %vm117_vm2, %v112_v19 }
 0x1b2   :  { %v187_v24 = vpop.f32.mrb[0].mxu1 }
 0x1b3   :  { %v188_v25 = vadd.f32 %v318_v23, %v187_v24  ;;  %v354_v26 = vpop.f32.mrb[1].mxu1 }
 0x1b5   :  { %v191_v27 = vmax.f32 %v188_v25, 0.0 }
 0x1b7   :  { %364 = vmatmul.mubr.msk.f32.vlgmr.msra.gmra.mrb[2].mxu0 %vm117_vm2, %v191_v27 }
 0x28a   :  { %v265_v39 = vpop.f32.mrb[2].mxu0 }
 0x28b   :  { %v266_v40 = vadd.f32 %v320_v37, %v265_v39  ;;  %v365_v41 = vpop.f32.mrb[3].mxu0 }
 0x28d   :  { %v275_v42 = vadd.f32 %v274_v38, %v266_v40 }
 0x28f   :  { %v276_v43 = vsub.f32 %v275_v42, %v266_v40  ;;  %297 = vst.msk [vmem:[#allocation2] sm:$0xff] %vm293_vm3, %v275_v42 }
 0x290   :  { %299 = vst.msk [vmem:[#allocation2] sm:$0xff] %vm298_vm4, %v266_v40 }
 0x291   :  { %v277_v44 = vmul.f32 %v276_v43, %v276_v43 }
 0x293   :  { %v278_v46 = vsub.f32 0.0, %v277_v44 }
 0x295   :  { %v286_v48 = vmul.f32 %v386_v45, %v278_v46 }
 0x297   :  { %v291_v49 = vsub.f32 %v286_v48, %v322_v47 }
 0x299   :  { %v323_v50 = vadd.f32 -0.9189385, %v291_v49 }
 0x29b   :  { %v294_v51 = vsel %vm293_vm3, %v323_v50, 0.0 }
 0x29c   :  { %295 = vadd.xlane.f32.xlu0 %v294_v51 }
 0x329   :  { %v296_v52 = vpop.xlane.xlu0 %295 }
 0x32a   :  { %301 = vst.msk [vmem:[#allocation2] sm:$0xff] %vm300_vm5, %v296_v52 }
 0x32b   :  { %398 = shalt.err (!%p395_p4)
}
 0x32c   :  { %s399_s24 = scalar_lea.hbm %s510_s4, 128 }
 0x32d   :  { %p400_p5 = scmp.ne.s32.totalorder %s510_s4, %s399_s24  ;;  %p403_p6 = scmp.lt.u32.totalorder %s399_s24, %s510_s4 }
 0x32f   :  { %p405_p7 = pnand %p403_p6, %p400_p5 }
 0x331   :  { %408 = shalt.err (!%p405_p7)
}
 0x332   :  { %311 = dma.vmem_to_hbm [thread:$0]  %s309_s21, 128, %s510_s4, [#allocation3]  }
 0x333   :  { %409 = dma.done.wait [#allocation3], 128  }
 0x334   :  { %410 = vsyncadd [#allocation3], 4294967168 }
 0x335   :  { %315 = vsyncpa [#allocation3], 1 }

</bundles_post_ra>
